<compile_context>
chip_gen: v7x
topology: tpu7x:2x2x1
jax: 0.10.0
libtpu: 0.0.40
codegen_flags: <defaults>
</compile_context>

<pallas_src>
import functools

import jax
import jax.numpy as jnp
from jax.experimental import pallas as pl
from jax.experimental.pallas import tpu as pltpu

LANES = 1024  # lane-dense last dim: 8 x 128 lanes per row


def _threshold_backward_kernel(grad_ref, x_ref, o_ref, *, threshold):
    # out = grad where input > threshold else 0 (dtype-robust zero + cast).
    zero = jnp.zeros((), dtype=o_ref.dtype)
    o_ref[...] = jnp.where(x_ref[...] > threshold,
                           grad_ref[...], zero).astype(o_ref.dtype)


# Per-generation tiling / VMEM policy.
#   block_rows : rows of LANES elements per tile
#   single_rows: largest array (in rows) allowed to run as one block
#   vmem_cap   : upper bound for the vmem_limit_bytes request
_GEN_CONFIG = {
    "v7x": dict(block_rows=512, single_rows=256, vmem_cap=32 << 20),
    "v6e": dict(block_rows=1024, single_rows=1024, vmem_cap=64 << 20),
    "v5e": dict(block_rows=512, single_rows=512, vmem_cap=32 << 20),
    "default": dict(block_rows=512, single_rows=512, vmem_cap=32 << 20),
}


def _tpu_generation() -> str:
    try:
        kind = jax.devices()[0].device_kind.lower()
    except Exception:
        return "default"
    if "v7" in kind:
        return "v7x"
    if "v6" in kind:
        return "v6e"
    if "v5" in kind:
        return "v5e"
    return "default"


def _choose_tiling(rows: int, gen: str, block_rows_override):
    """Return (block_rows, grid_steps)."""
    cfg = _GEN_CONFIG.get(gen, _GEN_CONFIG["default"])
    max_rows = block_rows_override if block_rows_override else cfg["block_rows"]
    single_limit = max_rows if block_rows_override else cfg["single_rows"]

    if rows <= single_limit:
        # Whole array as one block (block == full array dims, so any row count
        # is a legal block shape) -> no per-step pipeline overhead.
        return rows, 1

    block = max_rows
    grid = pl.cdiv(rows, block)
    if gen == "v7x" and grid > 1 and grid % 2 == 1:
        # Prefer an even step count so the 2 TensorCores stay balanced.
        block = pl.cdiv(rows, grid + 1)
        block = max(8, -(-block // 8) * 8)  # keep rows-dim a sublane multiple
        grid = pl.cdiv(rows, block)
    return block, grid


def threshold_backward_1d(grad: jax.Array,
                          x: jax.Array,
                          threshold: float = 1.0,
                          *,
                          block_rows: int | None = None,
                          donate_grad: bool = False) -> jax.Array:
    """aten.threshold_backward(grad, x, threshold) for 1D float arrays."""
    assert grad.ndim == 1 and x.shape == grad.shape and x.dtype == grad.dtype
    n = grad.shape[0]
    gen = _tpu_generation()

    rows = pl.cdiv(n, LANES)
    block, grid = _choose_tiling(rows, gen, block_rows)

    # Pad only to a multiple of LANES (never to a whole number of blocks); the
    # ragged last grid block is handled by Pallas's boundary masking.
    pad = rows * LANES - n
    if pad:
        # Pad value 0 fails `0 > 1`, and padded outputs are sliced away below.
        grad2 = jnp.pad(grad, (0, pad)).reshape(rows, LANES)
        x2 = jnp.pad(x, (0, pad)).reshape(rows, LANES)
    else:
        # Aligned fast path: no extra HBM passes, just a reshape.
        grad2 = grad.reshape(rows, LANES)
        x2 = x.reshape(rows, LANES)

    # VMEM request = actual working set (3 arrays x 2 buffers x tile) + margin,
    # capped per generation (v7x has only 64 MiB per TC).
    cfg = _GEN_CONFIG.get(gen, _GEN_CONFIG["default"])
    block_bytes = block * LANES * grad.dtype.itemsize
    vmem_limit = int(min(cfg["vmem_cap"],
                         max(16 << 20, 3 * 2 * block_bytes + (8 << 20))))

    kernel = functools.partial(_threshold_backward_kernel,
                               threshold=float(threshold))

    out2 = pl.pallas_call(
        kernel,
        out_shape=jax.ShapeDtypeStruct((rows, LANES), grad.dtype),
        grid=(grid,),
        in_specs=[
            pl.BlockSpec((block, LANES), lambda i: (i, 0)),
            pl.BlockSpec((block, LANES), lambda i: (i, 0)),
        ],
        out_specs=pl.BlockSpec((block, LANES), lambda i: (i, 0)),
        input_output_aliases=({0: 0} if donate_grad else {}),
        compiler_params=pltpu.CompilerParams(
            dimension_semantics=("parallel",),
            vmem_limit_bytes=vmem_limit,
        ),
    )(grad2, x2)

    out = out2.reshape(-1)
    return out[:n] if pad else out


def _reference(grad, x, threshold=1.0):
    return jnp.where(x > threshold, grad, jnp.zeros((), grad.dtype))


if __name__ == "__main__":
    key = jax.random.PRNGKey(0)
    keys = jax.random.split(key, 3)

    # (n, wrapper kwargs): module takes rank-1 float32 grad / input.
    checks = [
        (4096, {}),                    # LANES-aligned: no pad, single block
        (5000, {}),                    # non-aligned: LANES pad + trailing slice
        (20000, dict(block_rows=8)),   # multi-step grid with ragged last block
    ]

    for (n, kw), kk in zip(checks, keys):
        kg, kx = jax.random.split(kk)
        grad = jax.random.normal(kg, (n,), dtype=jnp.float32)
        x = jax.random.normal(kx, (n,), dtype=jnp.float32) * 2.0  # around threshold
        out = jax.block_until_ready(threshold_backward_1d(grad, x, 1.0, **kw))
        ref = _reference(grad, x, 1.0)
        assert out.shape == grad.shape and out.dtype == grad.dtype
        assert bool(jnp.all(out == ref)), f"mismatch at n={n}"

    print("KERNEL_OK")
</pallas_src>

<mosaic_0001>
module attributes {stable_mosaic.version = 11 : i64} {
  func.func @_threshold_backward_kernel(%arg0: i32, %arg1: memref<4x1024xf32, #tpu.memory_space<vmem>>, %arg2: memref<4x1024xf32, #tpu.memory_space<vmem>>, %arg3: memref<4x1024xf32, #tpu.memory_space<vmem>>) attributes {dimension_semantics = [#tpu.dimension_semantics<parallel>], iteration_bounds = array<i64: 1>, scalar_prefetch = 0 : i64, scratch_operands = 0 : i64, tpu.core_type = #tpu.core_type<tc>, window_params = [{transform_indices = @transform_0, window_bounds = array<i64: 4, 1024>}, {transform_indices = @transform_1, window_bounds = array<i64: 4, 1024>}, {transform_indices = @transform_2, window_bounds = array<i64: 4, 1024>}]} {
    %c0 = arith.constant 0 : index
    %c0_0 = arith.constant 0 : index
    %0 = vector.load %arg2[%c0, %c0_0] : memref<4x1024xf32, #tpu.memory_space<vmem>>, vector<4x1024xf32>
    %cst = arith.constant 1.000000e+00 : f32
    %1 = vector.broadcast %cst : f32 to vector<4x1024xf32>
    %2 = arith.cmpf ogt, %0, %1 : vector<4x1024xf32>
    %c0_1 = arith.constant 0 : index
    %c0_2 = arith.constant 0 : index
    %3 = vector.load %arg1[%c0_1, %c0_2] : memref<4x1024xf32, #tpu.memory_space<vmem>>, vector<4x1024xf32>
    %cst_3 = arith.constant 0.000000e+00 : f32
    %4 = vector.broadcast %cst_3 : f32 to vector<4x1024xf32>
    %5 = arith.select %2, %3, %4 : vector<4x1024xi1>, vector<4x1024xf32>
    %c0_4 = arith.constant 0 : index
    %c0_5 = arith.constant 0 : index
    %6 = vector.load %arg3[%c0_4, %c0_5] : memref<4x1024xf32, #tpu.memory_space<vmem>>, vector<4x1024xf32>
    tpu.vector_store %arg3[%c0_4, %c0_5], %5 {strides = array<i32>} : memref<4x1024xf32, #tpu.memory_space<vmem>>, vector<4x1024xf32>,
    return
  }
  func.func @transform_0(%arg0: i32) -> (i32, i32) {
    %c0_i32 = arith.constant 0 : i32
    %c0_i32_0 = arith.constant 0 : i32
    return %arg0, %c0_i32 : i32, i32
  }
  func.func @transform_1(%arg0: i32) -> (i32, i32) {
    %c0_i32 = arith.constant 0 : i32
    %c0_i32_0 = arith.constant 0 : i32
    return %arg0, %c0_i32 : i32, i32
  }
  func.func @transform_2(%arg0: i32) -> (i32, i32) {
    %c0_i32 = arith.constant 0 : i32
    %c0_i32_0 = arith.constant 0 : i32
    return %arg0, %c0_i32 : i32, i32
  }
}

</mosaic_0001>

<bundles_post_ra>
// kernel: tpu_custom_call.1
= control target key start
LH: loop header
LB: loop body
LE: loop exit
PB: predicated region body
PF: predicated region fallthrough
CT: control target
= control target key end

     0   :  { %7 = vsyncpa [#allocation3], 0  ;;  %s201_s0 = inlined_call_operand.hbm [shape: f32[4,1024], index: 0, kind: input, shape index: {}]   ;;  %s202_s1 = inlined_call_operand.hbm [shape: f32[4,1024], index: 1, kind: input, shape index: {}]   ;;  %s203_s2 = inlined_call_operand.hbm [shape: f32[4,1024], index: 2, kind: output, shape index: {}]  }
   0x1   :  { %8 = vsyncpa [#allocation6], 0 }
   0x2   :  { %9 = vsyncpa [#allocation4], 0  ;;  %s147_s9 = smov [#allocation2]   ;;  %s148_s11 = smov [#allocation5]  }
   0x3   :  { %s16_s10 = sshll.u32 %s147_s9, 4  ;;  %s26_s12 = sshll.u32 %s148_s11, 4  ;;  %s17_s10 = int_to_ptr.vmem [resolvable:$true] %s16_s10  ;;  %s27_s12 = int_to_ptr.vmem [resolvable:$true] %s26_s12 }
   0x4   :  { %s75_s15 = scalar_lea.hbm %s201_s0, 512 }
   0x5   :  { %p76_p0 = scmp.ne.s32.totalorder %s201_s0, %s75_s15  ;;  %p79_p1 = scmp.lt.u32.totalorder %s75_s15, %s201_s0 }
   0x7   :  { %p81_p2 = pnand %p79_p1, %p76_p0 }
   0x9   :  { %84 = shalt.err (!%p81_p2)
}
   0xa   :  { %s85_s20 = scalar_lea.vmem %s17_s10, 512  ;;  %p90_p4 = scmp.lt.s32.totalorder %s17_s10, %s17_s10 }
   0xb   :  { %p86_p3 = scmp.ne.s32.totalorder %s17_s10, %s85_s20  ;;  %p91_p5 = scmp.lt.s32.totalorder %s85_s20, %s85_s20 }
   0xd   :  { %p92_p6 = por %p91_p5, %p90_p4 }
   0xf   :  { %p93_p7 = pnand %p92_p6, %p86_p3 }
  0x11   :  { %96 = shalt.err (!%p93_p7)
}
  0x12   :  { %19 = dma.hbm_to_vmem [thread:$0]  %s201_s0, 512, %s17_s10, [#allocation3]  }
  0x13   :  { %s97_s25 = scalar_lea.hbm %s202_s1, 512 }
  0x14   :  { %p98_p8 = scmp.ne.s32.totalorder %s202_s1, %s97_s25  ;;  %p101_p9 = scmp.lt.u32.totalorder %s97_s25, %s202_s1 }
  0x16   :  { %p103_p10 = pnand %p101_p9, %p98_p8 }
  0x18   :  { %106 = shalt.err (!%p103_p10)
}
  0x19   :  { %s107_s30 = scalar_lea.vmem %s27_s12, 512  ;;  %p112_p12 = scmp.lt.s32.totalorder %s27_s12, %s27_s12 }
  0x1a   :  { %p108_p11 = scmp.ne.s32.totalorder %s27_s12, %s107_s30  ;;  %p113_p13 = scmp.lt.s32.totalorder %s107_s30, %s107_s30 }
  0x1c   :  { %p114_p0 = por %p113_p13, %p112_p12 }
  0x1e   :  { %p115_p1 = pnand %p114_p0, %p108_p11 }
  0x20   :  { %118 = shalt.err (!%p115_p1)
}
  0x21   :  { %29 = dma.hbm_to_vmem [thread:$0]  %s202_s1, 512, %s27_s12, [#allocation6]  }
  0x22   :  { %141 = dma.done.wait [#allocation3], 512  }
  0x23   :  { %142 = vsyncadd [#allocation3], 4294966784 }
  0x24   :  { %143 = dma.done.wait [#allocation6], 512  }
  0x25   :  { %144 = vsyncadd [#allocation6], 4294966784  ;;  %v36_v0 = vld [vmem:[#allocation5] sm:$0xff]  ;;  %v37_v2 = vld [vmem:[#allocation5 + $0x8] sm:$0xff]  ;;  %s149_s4 = smov [#allocation7]  }
  0x26   :  { %v44_v1 = vld [vmem:[#allocation2] sm:$0xff]  ;;  %s62_s5 = sshll.u32 %s149_s4, 4  ;;  %vm40_vm0 = vcmp.gt.f32.partialorder %v36_v0, 1.0  ;;  %vm41_vm1 = vcmp.gt.f32.partialorder %v37_v2, 1.0  ;;  %v45_v3 = vld [vmem:[#allocation2 + $0x8] sm:$0xff]  ;;  %v38_v4 = vld [vmem:[#allocation5 + $0x10] sm:$0xff]  ;;  %s63_s5 = int_to_ptr.vmem [resolvable:$true] %s62_s5 }
  0x27   :  { %v46_v5 = vld [vmem:[#allocation2 + $0x10] sm:$0xff]  ;;  %v48_v6 = vsel %vm40_vm0, %v44_v1, 0.0  ;;  %v49_v7 = vsel %vm41_vm1, %v45_v3, 0.0  ;;  %vm42_vm2 = vcmp.gt.f32.partialorder %v38_v4, 1.0  ;;  %v39_v8 = vld [vmem:[#allocation5 + $0x18] sm:$0xff]  ;;  %s119_s1 = scalar_lea.vmem %s63_s5, 512  ;;  %p124_p3 = scmp.lt.s32.totalorder %s63_s5, %s63_s5 }
  0x28   :  { %v47_v9 = vld [vmem:[#allocation2 + $0x18] sm:$0xff]  ;;  %52 = vst [vmem:[#allocation7] sm:$0xff] %v48_v6  ;;  %53 = vst [vmem:[#allocation7 + $0x8] sm:$0xff] %v49_v7  ;;  %v50_v10 = vsel %vm42_vm2, %v46_v5, 0.0  ;;  %vm43_vm3 = vcmp.gt.f32.partialorder %v39_v8, 1.0  ;;  %p120_p2 = scmp.ne.s32.totalorder %s63_s5, %s119_s1  ;;  %p125_p4 = scmp.lt.s32.totalorder %s119_s1, %s119_s1 }
  0x29   :  { %54 = vst [vmem:[#allocation7 + $0x10] sm:$0xff] %v50_v10  ;;  %v51_v11 = vsel %vm43_vm3, %v47_v9, 0.0 }
  0x2a   :  { %55 = vst [vmem:[#allocation7 + $0x18] sm:$0xff] %v51_v11  ;;  %p126_p5 = por %p125_p4, %p124_p3 }
  0x2c   :  { %p127_p6 = pnand %p126_p5, %p120_p2 }
  0x2e   :  { %130 = shalt.err (!%p127_p6)
}
  0x2f   :  { %s131_s8 = scalar_lea.hbm %s203_s2, 512 }
  0x30   :  { %p132_p7 = scmp.ne.s32.totalorder %s203_s2, %s131_s8  ;;  %p135_p8 = scmp.lt.u32.totalorder %s131_s8, %s203_s2 }
  0x32   :  { %p137_p9 = pnand %p135_p8, %p132_p7 }
  0x34   :  { %140 = shalt.err (!%p137_p9)
}
  0x35   :  { %65 = dma.vmem_to_hbm [thread:$0]  %s63_s5, 512, %s203_s2, [#allocation4]  }
  0x36   :  { %145 = dma.done.wait [#allocation4], 512  }
  0x37   :  { %146 = vsyncadd [#allocation4], 4294966784 }
  0x38   :  { %69 = vsyncpa [#allocation3], 1 }
  0x39   :  { %70 = vsyncpa [#allocation6], 1 }
  0x3a   :  { %71 = vsyncpa [#allocation4], 1 }

</bundles_post_ra>
